<compile_context>
chip_gen: v5e
topology: v5e:2x2
jax: 0.10.0
libtpu: 0.0.40
codegen_flags: <defaults>
</compile_context>

<pallas_src>
import math

import jax
import jax.numpy as jnp
from jax import lax
from jax.experimental import pallas as pl
from jax.experimental.pallas import tpu as pltpu


def _round_up(x, m):
    return ((x + m - 1) // m) * m


def _vmem_limit_bytes():
    # Per-core VMEM capacity; fall back to the smallest generation (v7x: 64 MiB/TC).
    try:
        cap = int(pltpu.get_tpu_info().vmem_capacity_bytes)
    except Exception:
        cap = 64 * 1024 * 1024
    # Leave headroom below physical; well above v5e's 16 MiB default scoped limit.
    return min((cap * 3) // 4, 100 * 1024 * 1024)


def _pick_s_tile(S, max_cout, budget):
    # Prefer multiples of 16 (bf16 sublane pack) so the in-kernel (k,s,C)->(k*s,C)
    # collapse is layout-preserving; fall back to the full S for tiny inputs.
    for cand in (256, 128, 64, 32, 16, 8):
        if S % cand == 0 and cand * max_cout * 16 <= budget:
            return cand
    return S


def _pick_k_tile(K, s_tile, cin_pad, max_cout, budget):
    # Largest K-chunk whose working set fits the VMEM budget, with M = k_tile*s_tile
    # capped so activations stay small; the k grid axis reduces the rest.
    for cand in range(K, 0, -1):
        if K % cand:
            continue
        m_rows = cand * s_tile
        est = (2 * cand * s_tile * cin_pad * 2      # double-buffered bf16 input block
               + m_rows * max_cout * 6              # peak f32 activation + bf16 copy
               + s_tile * max_cout * 4)             # f32 running-max scratch
        if m_rows <= 4096 and est <= budget:
            return cand
    return 1


# ---------------------------------------------------------------------------
# Pallas kernel: pointwise MLP (1x1 conv stack + ReLU) on one (k_tile, s_tile) block,
# max-reduced over the K grid axis into a resident f32 accumulator.
# ---------------------------------------------------------------------------
def _make_mlp_max_kernel(num_layers, k_tile, s_tile):
    def kernel(x_ref, *refs):
        o_ref, acc_ref = refs[-2], refs[-1]
        wb = refs[:-2]                                    # w1, b1, ..., wL, bL
        cin = x_ref.shape[-1]
        k = pl.program_id(2)

        # (k_tile, s_tile, Cin) -> (k_tile*s_tile, Cin): fold only this K-chunk into M.
        h = x_ref[...].reshape(k_tile * s_tile, cin)      # bf16
        for l in range(num_layers):
            w = wb[2 * l][...]                            # (Cin_l, Cout_l)  bf16
            b = wb[2 * l + 1][...]                        # (1, Cout_l)      f32
            h = jnp.dot(h, w, preferred_element_type=jnp.float32) + b
            h = jnp.maximum(h, 0.0)                       # Conv1x1 + folded BN + ReLU
            if l + 1 < num_layers:
                h = h.astype(jnp.bfloat16)                # bf16 MXU input for next layer

        # Partial max over this K-chunk (rows are K-major: row = kk*s_tile + s).
        if s_tile == 1:
            m = jnp.max(h, axis=0, keepdims=True)
        else:
            m = h[0:s_tile, :]
            for kk in range(1, k_tile):
                m = jnp.maximum(m, h[kk * s_tile:(kk + 1) * s_tile, :])

        @pl.when(k == 0)
        def _():
            acc_ref[...] = m

        @pl.when(k > 0)
        def _():
            acc_ref[...] = jnp.maximum(acc_ref[...], m)

        @pl.when(k == pl.num_programs(2) - 1)
        def _():
            o_ref[...] = acc_ref[...].astype(o_ref.dtype)

    return kernel


def _mlp_and_max_impl(grouped, weights, biases, single_buffer_weights):
    B, K, S, Cin = grouped.shape
    num_layers = len(weights)
    Cout = int(weights[-1].shape[1])                      # padded to a 128-multiple
    max_cout = max(int(w.shape[1]) for w in weights)

    vmem_limit = _vmem_limit_bytes()
    budget = vmem_limit // 3                              # rest: weights, pipeline slack
    s_tile = _pick_s_tile(S, max_cout, budget)
    k_tile = _pick_k_tile(K, s_tile, Cin, max_cout, budget)

    wspec_kwargs = {}
    if single_buffer_weights:
        # Constant index_map -> never re-fetched; single-buffer to halve weight VMEM.
        wspec_kwargs = dict(pipeline_mode=pl.Buffered(buffer_count=1))

    in_specs = [pl.BlockSpec((None, k_tile, s_tile, Cin),
                             lambda b, s, k: (b, k, s, 0))]
    wb_inputs = []
    for w, bias in zip(weights, biases):
        in_specs.append(pl.BlockSpec(w.shape, lambda b, s, k: (0, 0), **wspec_kwargs))
        in_specs.append(pl.BlockSpec(bias.shape, lambda b, s, k: (0, 0), **wspec_kwargs))
        wb_inputs.extend([w, bias])

    flops = 2 * B * K * S * sum(int(w.shape[0]) * int(w.shape[1]) for w in weights)
    bytes_accessed = (int(grouped.size) * 2 + B * S * Cout * 2
                      + sum(int(w.size) * 2 + int(b.size) * 4
                            for w, b in zip(weights, biases)))

    return pl.pallas_call(
        _make_mlp_max_kernel(num_layers, k_tile, s_tile),
        out_shape=jax.ShapeDtypeStruct((B, S, Cout), jnp.bfloat16),
        grid=(B, S // s_tile, K // k_tile),
        in_specs=in_specs,
        out_specs=pl.BlockSpec((None, s_tile, Cout), lambda b, s, k: (b, s, 0)),
        scratch_shapes=[pltpu.VMEM((s_tile, Cout), jnp.float32)],
        compiler_params=pltpu.CompilerParams(
            dimension_semantics=("parallel", "parallel", "arbitrary"),
            vmem_limit_bytes=int(vmem_limit)),
        cost_estimate=pl.CostEstimate(flops=int(flops), transcendentals=0,
                                      bytes_accessed=int(bytes_accessed)),
    )(grouped, *wb_inputs)


def mlp_and_max(grouped, weights, biases):
    """grouped: [B, K, S, Cin_pad] bf16 -> [B, S, Cout_pad] bf16 = max_K(MLP(grouped))."""
    try:
        return _mlp_and_max_impl(grouped, weights, biases, single_buffer_weights=True)
    except Exception:
        # pl.Buffered(1) unsupported on this jax version -> default double-buffering.
        return _mlp_and_max_impl(grouped, weights, biases, single_buffer_weights=False)


# ---------------------------------------------------------------------------
# Plain-JAX glue: FPS, ball query (data-dependent index generation)
# ---------------------------------------------------------------------------
def furthest_point_sampling(xyz_bn3, num_samples):
    # xyz_bn3: [B, N, 3] -> [B, num_samples] int32
    B, N, _ = xyz_bn3.shape

    def body(i, carry):
        dist, farthest, idx = carry
        idx = idx.at[:, i].set(farthest)
        centroid = jnp.take_along_axis(xyz_bn3, farthest[:, None, None], axis=1)
        d = jnp.sum((xyz_bn3 - centroid) ** 2, axis=-1)
        dist = jnp.minimum(dist, d)
        farthest = jnp.argmax(dist, axis=-1).astype(jnp.int32)
        return dist, farthest, idx

    dist0 = jnp.full((B, N), 1e10, dtype=jnp.float32)
    far0 = jnp.zeros((B,), dtype=jnp.int32)
    idx0 = jnp.zeros((B, num_samples), dtype=jnp.int32)
    _, _, idx = lax.fori_loop(0, num_samples, body, (dist0, far0, idx0))
    return idx


def ball_query(centers_bs3, xyz_bn3, radius, K):
    # centers_bs3: [B, S, 3], xyz_bn3: [B, N, 3] -> idx [B, S, K] int32
    N = xyz_bn3.shape[1]
    sqrdist = jnp.sum(
        (centers_bs3[:, :, None, :] - xyz_bn3[:, None, :, :]) ** 2, axis=-1)
    arange = jnp.arange(N, dtype=jnp.int32)
    cand = jnp.where(sqrdist > radius * radius, N, arange[None, None, :])
    # K smallest candidate indices in ascending order (== sort(...)[:K]) via top_k.
    neg_vals, _ = lax.top_k(-cand, K)
    idx = -neg_vals
    first = idx[:, :, :1]
    idx = jnp.where(idx == N, first, idx)
    return idx.astype(jnp.int32)


# ---------------------------------------------------------------------------
# Module
# ---------------------------------------------------------------------------
class PointNetSetAbstraction:
    def __init__(self, num_fps_points, radius, num_bq_points, init_in_channel,
                 mlp, group_all, key):
        self.num_fps_points = num_fps_points
        self.radius = radius
        self.num_bq_points = num_bq_points
        self.group_all = group_all
        self.in_channel = init_in_channel            # = 3 + C(points), as in the reference
        self.cin_pad = _round_up(init_in_channel, 16)  # bf16 sublane pack
        self.out_channel = mlp[-1]

        # Deterministic synthetic Conv2d(1x1) params; eval-mode default BatchNorm2d
        # folded in as a 1/sqrt(1+eps) scale.  Channels zero-padded for lane density.
        bn_scale = 1.0 / math.sqrt(1.0 + 1e-5)
        weights, biases = [], []
        in_ch, in_pad = init_in_channel, self.cin_pad
        for out_ch in mlp:
            out_pad = _round_up(out_ch, 128)
            key, kw, kb = jax.random.split(key, 3)
            w = jax.random.normal(kw, (in_ch, out_ch), jnp.float32)
            w = w * (1.0 / math.sqrt(in_ch)) * bn_scale
            b = jax.random.normal(kb, (1, out_ch), jnp.float32) * 0.01 * bn_scale
            w_pad = jnp.zeros((in_pad, out_pad), jnp.float32).at[:in_ch, :out_ch].set(w)
            b_pad = jnp.zeros((1, out_pad), jnp.float32).at[:, :out_ch].set(b)
            weights.append(w_pad.astype(jnp.bfloat16))   # bf16 MXU weights
            biases.append(b_pad)                         # f32 bias (added post-accumulate)
            in_ch, in_pad = out_ch, out_pad
        self.weights = weights
        self.biases = biases

    def __call__(self, xyz, points):
        # xyz: [B, 3, N], points: [B, C, N]
        B, _, N = xyz.shape
        C = points.shape[1]
        assert 3 + C == self.in_channel, "init_in_channel must equal 3 + C"

        xyz_bn3 = jnp.transpose(xyz, (0, 2, 1))                    # [B, N, 3]
        pts_bnc = jnp.transpose(points, (0, 2, 1))                 # [B, N, C]
        cin, cin_pad = self.in_channel, self.cin_pad
        feats = jnp.concatenate(
            [xyz_bn3, pts_bnc, jnp.zeros((B, N, cin_pad - cin), xyz.dtype)],
            axis=-1)                                               # [B, N, Cin_pad]

        if self.group_all:
            # sampling_and_group_layer_all: S=1 "center" at origin, all N points grouped,
            # coords NOT centered.  Max over N is the kernel's K-reduction axis
            # (grouped = [B, N, 1, Cin_pad]) -> no [B, N, Cout] f32 HBM round-trip.
            new_xyz = jnp.zeros((B, 3, 1), xyz.dtype)
            grouped = feats[:, :, None, :].astype(jnp.bfloat16)    # [B, N, 1, Cin_pad]
            out = mlp_and_max(grouped, self.weights, self.biases)  # [B, 1, Cout_pad] bf16
            new_points = jnp.transpose(out[:, :, :self.out_channel], (0, 2, 1))
            return new_xyz, new_points.astype(jnp.float32)         # [B,3,1], [B,Cout,1]

        S, K = self.num_fps_points, self.num_bq_points

        # sampling_layer: FPS -> new_xyz [B, 3, S]
        fps_idx = furthest_point_sampling(xyz_bn3, S)              # [B, S]
        centers = jnp.take_along_axis(xyz_bn3, fps_idx[:, :, None], axis=1)  # [B, S, 3]
        new_xyz = jnp.transpose(centers, (0, 2, 1))                # [B, 3, S]

        # group_layer: ball query + channels-last gather directly in K-major layout
        idx = ball_query(centers, xyz_bn3, self.radius, K)         # [B, S, K]
        idxT = jnp.swapaxes(idx, 1, 2).reshape(B, K * S, 1)        # K-major flat indices
        grouped = jnp.take_along_axis(feats, idxT, axis=1)         # [B, K*S, Cin_pad]
        grouped = grouped.reshape(B, K, S, cin_pad)
        # subtract centers from the first 3 (coord) channels only; point features raw
        center_off = jnp.concatenate(
            [centers, jnp.zeros((B, S, cin_pad - 3), centers.dtype)], axis=-1)
        grouped = (grouped - center_off[:, None, :, :]).astype(jnp.bfloat16)

        out = mlp_and_max(grouped, self.weights, self.biases)      # [B, S, Cout_pad] bf16
        new_points = jnp.transpose(out[:, :, :self.out_channel], (0, 2, 1))  # [B, Cout, S]
        return new_xyz, new_points.astype(jnp.float32)


# ---------------------------------------------------------------------------
if __name__ == "__main__":
    key = jax.random.PRNGKey(0)
    B, N, C = 2, 16, 4
    num_fps_points = 8
    radius = 0.4
    num_bq_points = 8
    mlp = [8, 16, 32]

    k_xyz, k_pts, k_p1, k_p2 = jax.random.split(key, 4)
    xyz = jax.random.normal(k_xyz, (B, 3, N), dtype=jnp.float32)
    points = jax.random.normal(k_pts, (B, C, N), dtype=jnp.float32)

    # Standard (FPS + ball query) path
    sa = PointNetSetAbstraction(num_fps_points, radius, num_bq_points,
                                3 + C, mlp, False, k_p1)
    new_xyz, new_points = sa(xyz, points)
    jax.block_until_ready((new_xyz, new_points))
    assert new_xyz.shape == (B, 3, num_fps_points)
    assert new_points.shape == (B, mlp[-1], num_fps_points)
    assert bool(jnp.all(jnp.isfinite(new_points)))

    # group_all path
    sa_all = PointNetSetAbstraction(1, 0.0, N, 3 + C, [8, 16], True, k_p2)
    nx_all, np_all = sa_all(xyz, points)
    jax.block_until_ready((nx_all, np_all))
    assert nx_all.shape == (B, 3, 1)
    assert np_all.shape == (B, 16, 1)
    assert bool(jnp.all(jnp.isfinite(np_all)))

    print("KERNEL_OK")
</pallas_src>

<mosaic_0001>
module attributes {stable_mosaic.version = 11 : i64} {
  func.func @kernel(%arg0: i32, %arg1: i32, %arg2: i32, %arg3: memref<1x8x8x16xbf16, #tpu.memory_space<vmem>>, %arg4: memref<16x128xbf16, #tpu.memory_space<vmem>>, %arg5: memref<1x128xf32, #tpu.memory_space<vmem>>, %arg6: memref<128x128xbf16, #tpu.memory_space<vmem>>, %arg7: memref<1x128xf32, #tpu.memory_space<vmem>>, %arg8: memref<128x128xbf16, #tpu.memory_space<vmem>>, %arg9: memref<1x128xf32, #tpu.memory_space<vmem>>, %arg10: memref<1x8x128xbf16, #tpu.memory_space<vmem>>, %arg11: memref<8x128xf32, #tpu.memory_space<vmem>>) attributes {dimension_semantics = [#tpu.dimension_semantics<parallel>, #tpu.dimension_semantics<parallel>, #tpu.dimension_semantics<arbitrary>], iteration_bounds = array<i64: 2, 1, 1>, scalar_prefetch = 0 : i64, scratch_operands = 1 : i64, tpu.core_type = #tpu.core_type<tc>, window_params = [{transform_indices = @transform_0, window_bounds = array<i64: 1, 8, 8, 16>}, {pipeline_mode = #tpu.pipeline_mode<synchronous>, transform_indices = @transform_1, window_bounds = array<i64: 16, 128>}, {pipeline_mode = #tpu.pipeline_mode<synchronous>, transform_indices = @transform_2, window_bounds = array<i64: 1, 128>}, {pipeline_mode = #tpu.pipeline_mode<synchronous>, transform_indices = @transform_3, window_bounds = array<i64: 128, 128>}, {pipeline_mode = #tpu.pipeline_mode<synchronous>, transform_indices = @transform_4, window_bounds = array<i64: 1, 128>}, {pipeline_mode = #tpu.pipeline_mode<synchronous>, transform_indices = @transform_5, window_bounds = array<i64: 128, 128>}, {pipeline_mode = #tpu.pipeline_mode<synchronous>, transform_indices = @transform_6, window_bounds = array<i64: 1, 128>}, {transform_indices = @transform_7, window_bounds = array<i64: 1, 8, 128>}]} {
    %c0 = arith.constant 0 : index
    %c0_0 = arith.constant 0 : index
    %c0_1 = arith.constant 0 : index
    %c0_2 = arith.constant 0 : index
    %0 = vector.load %arg3[%c0, %c0_0, %c0_1, %c0_2] : memref<1x8x8x16xbf16, #tpu.memory_space<vmem>>, vector<1x8x8x16xbf16>
    %1 = vector.shape_cast %0 : vector<1x8x8x16xbf16> to vector<8x8x16xbf16>
    %2 = vector.shape_cast %1 : vector<8x8x16xbf16> to vector<64x16xbf16>
    %c0_3 = arith.constant 0 : index
    %c0_4 = arith.constant 0 : index
    %3 = vector.load %arg4[%c0_3, %c0_4] : memref<16x128xbf16, #tpu.memory_space<vmem>>, vector<16x128xbf16>
    %c0_5 = arith.constant 0 : index
    %c0_6 = arith.constant 0 : index
    %4 = vector.load %arg5[%c0_5, %c0_6] : memref<1x128xf32, #tpu.memory_space<vmem>>, vector<1x128xf32>
    %cst = arith.constant dense<0.000000e+00> : vector<64x128xf32>
    %5 = tpu.matmul %2, %3, %cst {dimension_numbers = #tpu.dot_dimension_numbers<[1], [0], [0], [1], [0, 0, 1, 1], [], []>} : vector<64x16xbf16>, vector<16x128xbf16>, vector<64x128xf32> -> vector<64x128xf32>
    %6 = vector.broadcast %4 : vector<1x128xf32> to vector<64x128xf32>
    %7 = arith.addf %5, %6 : vector<64x128xf32>
    %cst_7 = arith.constant 0.000000e+00 : f32
    %8 = vector.broadcast %cst_7 : f32 to vector<64x128xf32>
    %9 = arith.maximumf %7, %8 : vector<64x128xf32>
    %10 = arith.truncf %9 : vector<64x128xf32> to vector<64x128xbf16>
    %c0_8 = arith.constant 0 : index
    %c0_9 = arith.constant 0 : index
    %11 = vector.load %arg6[%c0_8, %c0_9] : memref<128x128xbf16, #tpu.memory_space<vmem>>, vector<128x128xbf16>
    %c0_10 = arith.constant 0 : index
    %c0_11 = arith.constant 0 : index
    %12 = vector.load %arg7[%c0_10, %c0_11] : memref<1x128xf32, #tpu.memory_space<vmem>>, vector<1x128xf32>
    %cst_12 = arith.constant dense<0.000000e+00> : vector<64x128xf32>
    %13 = tpu.matmul %10, %11, %cst_12 {dimension_numbers = #tpu.dot_dimension_numbers<[1], [0], [0], [1], [0, 0, 1, 1], [], []>} : vector<64x128xbf16>, vector<128x128xbf16>, vector<64x128xf32> -> vector<64x128xf32>
    %14 = vector.broadcast %12 : vector<1x128xf32> to vector<64x128xf32>
    %15 = arith.addf %13, %14 : vector<64x128xf32>
    %cst_13 = arith.constant 0.000000e+00 : f32
    %16 = vector.broadcast %cst_13 : f32 to vector<64x128xf32>
    %17 = arith.maximumf %15, %16 : vector<64x128xf32>
    %18 = arith.truncf %17 : vector<64x128xf32> to vector<64x128xbf16>
    %c0_14 = arith.constant 0 : index
    %c0_15 = arith.constant 0 : index
    %19 = vector.load %arg8[%c0_14, %c0_15] : memref<128x128xbf16, #tpu.memory_space<vmem>>, vector<128x128xbf16>
    %c0_16 = arith.constant 0 : index
    %c0_17 = arith.constant 0 : index
    %20 = vector.load %arg9[%c0_16, %c0_17] : memref<1x128xf32, #tpu.memory_space<vmem>>, vector<1x128xf32>
    %cst_18 = arith.constant dense<0.000000e+00> : vector<64x128xf32>
    %21 = tpu.matmul %18, %19, %cst_18 {dimension_numbers = #tpu.dot_dimension_numbers<[1], [0], [0], [1], [0, 0, 1, 1], [], []>} : vector<64x128xbf16>, vector<128x128xbf16>, vector<64x128xf32> -> vector<64x128xf32>
    %22 = vector.broadcast %20 : vector<1x128xf32> to vector<64x128xf32>
    %23 = arith.addf %21, %22 : vector<64x128xf32>
    %cst_19 = arith.constant 0.000000e+00 : f32
    %24 = vector.broadcast %cst_19 : f32 to vector<64x128xf32>
    %25 = arith.maximumf %23, %24 : vector<64x128xf32>
    %26 = vector.extract_strided_slice %25 {offsets = [0, 0], sizes = [8, 128], strides = [1, 1]} : vector<64x128xf32> to vector<8x128xf32>
    %27 = vector.extract_strided_slice %25 {offsets = [8, 0], sizes = [8, 128], strides = [1, 1]} : vector<64x128xf32> to vector<8x128xf32>
    %28 = arith.maximumf %26, %27 : vector<8x128xf32>
    %29 = vector.extract_strided_slice %25 {offsets = [16, 0], sizes = [8, 128], strides = [1, 1]} : vector<64x128xf32> to vector<8x128xf32>
    %30 = arith.maximumf %28, %29 : vector<8x128xf32>
    %31 = vector.extract_strided_slice %25 {offsets = [24, 0], sizes = [8, 128], strides = [1, 1]} : vector<64x128xf32> to vector<8x128xf32>
    %32 = arith.maximumf %30, %31 : vector<8x128xf32>
    %33 = vector.extract_strided_slice %25 {offsets = [32, 0], sizes = [8, 128], strides = [1, 1]} : vector<64x128xf32> to vector<8x128xf32>
    %34 = arith.maximumf %32, %33 : vector<8x128xf32>
    %35 = vector.extract_strided_slice %25 {offsets = [40, 0], sizes = [8, 128], strides = [1, 1]} : vector<64x128xf32> to vector<8x128xf32>
    %36 = arith.maximumf %34, %35 : vector<8x128xf32>
    %37 = vector.extract_strided_slice %25 {offsets = [48, 0], sizes = [8, 128], strides = [1, 1]} : vector<64x128xf32> to vector<8x128xf32>
    %38 = arith.maximumf %36, %37 : vector<8x128xf32>
    %39 = vector.extract_strided_slice %25 {offsets = [56, 0], sizes = [8, 128], strides = [1, 1]} : vector<64x128xf32> to vector<8x128xf32>
    %40 = arith.maximumf %38, %39 : vector<8x128xf32>
    %c0_i32 = arith.constant 0 : i32
    %41 = arith.cmpi eq, %arg2, %c0_i32 : i32
    %42 = arith.extui %41 : i1 to i32
    %c0_i32_20 = arith.constant 0 : i32
    %43 = arith.cmpi ne, %42, %c0_i32_20 : i32
    scf.if %43 {
      %c0_25 = arith.constant 0 : index
      %c0_26 = arith.constant 0 : index
      %50 = vector.load %arg11[%c0_25, %c0_26] : memref<8x128xf32, #tpu.memory_space<vmem>>, vector<8x128xf32>
      tpu.vector_store %arg11[%c0_25, %c0_26], %40 {strides = array<i32>} : memref<8x128xf32, #tpu.memory_space<vmem>>, vector<8x128xf32>,
    } else {
    }
    %c0_i32_21 = arith.constant 0 : i32
    %44 = arith.cmpi sgt, %arg2, %c0_i32_21 : i32
    %45 = arith.extui %44 : i1 to i32
    %c0_i32_22 = arith.constant 0 : i32
    %46 = arith.cmpi ne, %45, %c0_i32_22 : i32
    scf.if %46 {
      %c0_25 = arith.constant 0 : index
      %c0_26 = arith.constant 0 : index
      %50 = vector.load %arg11[%c0_25, %c0_26] : memref<8x128xf32, #tpu.memory_space<vmem>>, vector<8x128xf32>
      %51 = arith.maximumf %50, %40 : vector<8x128xf32>
      %c0_27 = arith.constant 0 : index
      %c0_28 = arith.constant 0 : index
      %52 = vector.load %arg11[%c0_27, %c0_28] : memref<8x128xf32, #tpu.memory_space<vmem>>, vector<8x128xf32>
      tpu.vector_store %arg11[%c0_27, %c0_28], %51 {strides = array<i32>} : memref<8x128xf32, #tpu.memory_space<vmem>>, vector<8x128xf32>,
    } else {
    }
    %c0_i32_23 = arith.constant 0 : i32
    %47 = arith.cmpi eq, %arg2, %c0_i32_23 : i32
    %48 = arith.extui %47 : i1 to i32
    %c0_i32_24 = arith.constant 0 : i32
    %49 = arith.cmpi ne, %48, %c0_i32_24 : i32
    scf.if %49 {
      %c0_25 = arith.constant 0 : index
      %c0_26 = arith.constant 0 : index
      %50 = vector.load %arg11[%c0_25, %c0_26] : memref<8x128xf32, #tpu.memory_space<vmem>>, vector<8x128xf32>
      %51 = arith.truncf %50 : vector<8x128xf32> to vector<8x128xbf16>
      %c0_27 = arith.constant 0 : index
      %c0_28 = arith.constant 0 : index
      %c0_29 = arith.constant 0 : index
      %52 = vector.load %arg10[%c0_27, %c0_28, %c0_29] : memref<1x8x128xbf16, #tpu.memory_space<vmem>>, vector<1x8x128xbf16>
      %53 = vector.shape_cast %52 : vector<1x8x128xbf16> to vector<8x128xbf16>
      %54 = vector.shape_cast %51 : vector<8x128xbf16> to vector<1x8x128xbf16>
      tpu.vector_store %arg10[%c0_27, %c0_28, %c0_29], %54 {strides = array<i32>} : memref<1x8x128xbf16, #tpu.memory_space<vmem>>, vector<1x8x128xbf16>,
    } else {
    }
    return
  }
  func.func @transform_0(%arg0: i32, %arg1: i32, %arg2: i32) -> (i32, i32, i32, i32) {
    %c0_i32 = arith.constant 0 : i32
    %c0_i32_0 = arith.constant 0 : i32
    return %arg0, %arg2, %arg1, %c0_i32 : i32, i32, i32, i32
  }
  func.func @transform_1(%arg0: i32, %arg1: i32, %arg2: i32) -> (i32, i32) {
    %c0_i32 = arith.constant 0 : i32
    %c0_i32_0 = arith.constant 0 : i32
    %c0_i32_1 = arith.constant 0 : i32
    return %c0_i32, %c0_i32_0 : i32, i32
  }
  func.func @transform_2(%arg0: i32, %arg1: i32, %arg2: i32) -> (i32, i32) {
    %c0_i32 = arith.constant 0 : i32
    %c0_i32_0 = arith.constant 0 : i32
    %c0_i32_1 = arith.constant 0 : i32
    return %c0_i32, %c0_i32_0 : i32, i32
  }
  func.func @transform_3(%arg0: i32, %arg1: i32, %arg2: i32) -> (i32, i32) {
    %c0_i32 = arith.constant 0 : i32
    %c0_i32_0 = arith.constant 0 : i32
    %c0_i32_1 = arith.constant 0 : i32
    return %c0_i32, %c0_i32_0 : i32, i32
  }
  func.func @transform_4(%arg0: i32, %arg1: i32, %arg2: i32) -> (i32, i32) {
    %c0_i32 = arith.constant 0 : i32
    %c0_i32_0 = arith.constant 0 : i32
    %c0_i32_1 = arith.constant 0 : i32
    return %c0_i32, %c0_i32_0 : i32, i32
  }
  func.func @transform_5(%arg0: i32, %arg1: i32, %arg2: i32) -> (i32, i32) {
    %c0_i32 = arith.constant 0 : i32
    %c0_i32_0 = arith.constant 0 : i32
    %c0_i32_1 = arith.constant 0 : i32
    return %c0_i32, %c0_i32_0 : i32, i32
  }
  func.func @transform_6(%arg0: i32, %arg1: i32, %arg2: i32) -> (i32, i32) {
    %c0_i32 = arith.constant 0 : i32
    %c0_i32_0 = arith.constant 0 : i32
    %c0_i32_1 = arith.constant 0 : i32
    return %c0_i32, %c0_i32_0 : i32, i32
  }
  func.func @transform_7(%arg0: i32, %arg1: i32, %arg2: i32) -> (i32, i32, i32) {
    %c0_i32 = arith.constant 0 : i32
    %c0_i32_0 = arith.constant 0 : i32
    return %arg0, %arg1, %c0_i32 : i32, i32, i32
  }
}

module attributes {stable_mosaic.version = 11 : i64} {
  func.func @kernel(%arg0: i32, %arg1: i32, %arg2: i32, %arg3: memref<1x8x8x16xbf16, #tpu.memory_space<vmem>>, %arg4: memref<16x128xbf16, #tpu.memory_space<vmem>>, %arg5: memref<1x128xf32, #tpu.memory_space<vmem>>, %arg6: memref<128x128xbf16, #tpu.memory_space<vmem>>, %arg7: memref<1x128xf32, #tpu.memory_space<vmem>>, %arg8: memref<128x128xbf16, #tpu.memory_space<vmem>>, %arg9: memref<1x128xf32, #tpu.memory_space<vmem>>, %arg10: memref<1x8x128xbf16, #tpu.memory_space<vmem>>, %arg11: memref<8x128xf32, #tpu.memory_space<vmem>>) attributes {dimension_semantics = [#tpu.dimension_semantics<parallel>, #tpu.dimension_semantics<parallel>, #tpu.dimension_semantics<arbitrary>], iteration_bounds = array<i64: 2, 1, 1>, scalar_prefetch = 0 : i64, scratch_operands = 1 : i64, tpu.core_type = #tpu.core_type<tc>, window_params = [{transform_indices = @transform_0, window_bounds = array<i64: 1, 8, 8, 16>}, {pipeline_mode = #tpu.pipeline_mode<synchronous>, transform_indices = @transform_1, window_bounds = array<i64: 16, 128>}, {pipeline_mode = #tpu.pipeline_mode<synchronous>, transform_indices = @transform_2, window_bounds = array<i64: 1, 128>}, {pipeline_mode = #tpu.pipeline_mode<synchronous>, transform_indices = @transform_3, window_bounds = array<i64: 128, 128>}, {pipeline_mode = #tpu.pipeline_mode<synchronous>, transform_indices = @transform_4, window_bounds = array<i64: 1, 128>}, {pipeline_mode = #tpu.pipeline_mode<synchronous>, transform_indices = @transform_5, window_bounds = array<i64: 128, 128>}, {pipeline_mode = #tpu.pipeline_mode<synchronous>, transform_indices = @transform_6, window_bounds = array<i64: 1, 128>}, {transform_indices = @transform_7, window_bounds = array<i64: 1, 8, 128>}]} {
    %c0 = arith.constant 0 : index
    %c0_0 = arith.constant 0 : index
    %c0_1 = arith.constant 0 : index
    %c0_2 = arith.constant 0 : index
    %0 = vector.load %arg3[%c0, %c0_0, %c0_1, %c0_2] : memref<1x8x8x16xbf16, #tpu.memory_space<vmem>>, vector<1x8x8x16xbf16>
    %1 = vector.shape_cast %0 : vector<1x8x8x16xbf16> to vector<8x8x16xbf16>
    %2 = vector.shape_cast %1 : vector<8x8x16xbf16> to vector<64x16xbf16>
    %c0_3 = arith.constant 0 : index
    %c0_4 = arith.constant 0 : index
    %3 = vector.load %arg4[%c0_3, %c0_4] : memref<16x128xbf16, #tpu.memory_space<vmem>>, vector<16x128xbf16>
    %c0_5 = arith.constant 0 : index
    %c0_6 = arith.constant 0 : index
    %4 = vector.load %arg5[%c0_5, %c0_6] : memref<1x128xf32, #tpu.memory_space<vmem>>, vector<1x128xf32>
    %cst = arith.constant dense<0.000000e+00> : vector<64x128xf32>
    %5 = tpu.matmul %2, %3, %cst {dimension_numbers = #tpu.dot_dimension_numbers<[1], [0], [0], [1], [0, 0, 1, 1], [], []>} : vector<64x16xbf16>, vector<16x128xbf16>, vector<64x128xf32> -> vector<64x128xf32>
    %6 = vector.broadcast %4 : vector<1x128xf32> to vector<64x128xf32>
    %7 = arith.addf %5, %6 : vector<64x128xf32>
    %cst_7 = arith.constant 0.000000e+00 : f32
    %8 = vector.broadcast %cst_7 : f32 to vector<64x128xf32>
    %9 = arith.maximumf %7, %8 : vector<64x128xf32>
    %10 = arith.truncf %9 : vector<64x128xf32> to vector<64x128xbf16>
    %c0_8 = arith.constant 0 : index
    %c0_9 = arith.constant 0 : index
    %11 = vector.load %arg6[%c0_8, %c0_9] : memref<128x128xbf16, #tpu.memory_space<vmem>>, vector<128x128xbf16>
    %c0_10 = arith.constant 0 : index
    %c0_11 = arith.constant 0 : index
    %12 = vector.load %arg7[%c0_10, %c0_11] : memref<1x128xf32, #tpu.memory_space<vmem>>, vector<1x128xf32>
    %cst_12 = arith.constant dense<0.000000e+00> : vector<64x128xf32>
    %13 = tpu.matmul %10, %11, %cst_12 {dimension_numbers = #tpu.dot_dimension_numbers<[1], [0], [0], [1], [0, 0, 1, 1], [], []>} : vector<64x128xbf16>, vector<128x128xbf16>, vector<64x128xf32> -> vector<64x128xf32>
    %14 = vector.broadcast %12 : vector<1x128xf32> to vector<64x128xf32>
    %15 = arith.addf %13, %14 : vector<64x128xf32>
    %cst_13 = arith.constant 0.000000e+00 : f32
    %16 = vector.broadcast %cst_13 : f32 to vector<64x128xf32>
    %17 = arith.maximumf %15, %16 : vector<64x128xf32>
    %18 = arith.truncf %17 : vector<64x128xf32> to vector<64x128xbf16>
    %c0_14 = arith.constant 0 : index
    %c0_15 = arith.constant 0 : index
    %19 = vector.load %arg8[%c0_14, %c0_15] : memref<128x128xbf16, #tpu.memory_space<vmem>>, vector<128x128xbf16>
    %c0_16 = arith.constant 0 : index
    %c0_17 = arith.constant 0 : index
    %20 = vector.load %arg9[%c0_16, %c0_17] : memref<1x128xf32, #tpu.memory_space<vmem>>, vector<1x128xf32>
    %cst_18 = arith.constant dense<0.000000e+00> : vector<64x128xf32>
    %21 = tpu.matmul %18, %19, %cst_18 {dimension_numbers = #tpu.dot_dimension_numbers<[1], [0], [0], [1], [0, 0, 1, 1], [], []>} : vector<64x128xbf16>, vector<128x128xbf16>, vector<64x128xf32> -> vector<64x128xf32>
    %22 = vector.broadcast %20 : vector<1x128xf32> to vector<64x128xf32>
    %23 = arith.addf %21, %22 : vector<64x128xf32>
    %cst_19 = arith.constant 0.000000e+00 : f32
    %24 = vector.broadcast %cst_19 : f32 to vector<64x128xf32>
    %25 = arith.maximumf %23, %24 : vector<64x128xf32>
    %26 = vector.extract_strided_slice %25 {offsets = [0, 0], sizes = [8, 128], strides = [1, 1]} : vector<64x128xf32> to vector<8x128xf32>
    %27 = vector.extract_strided_slice %25 {offsets = [8, 0], sizes = [8, 128], strides = [1, 1]} : vector<64x128xf32> to vector<8x128xf32>
    %28 = arith.maximumf %26, %27 : vector<8x128xf32>
    %29 = vector.extract_strided_slice %25 {offsets = [16, 0], sizes = [8, 128], strides = [1, 1]} : vector<64x128xf32> to vector<8x128xf32>
    %30 = arith.maximumf %28, %29 : vector<8x128xf32>
    %31 = vector.extract_strided_slice %25 {offsets = [24, 0], sizes = [8, 128], strides = [1, 1]} : vector<64x128xf32> to vector<8x128xf32>
    %32 = arith.maximumf %30, %31 : vector<8x128xf32>
    %33 = vector.extract_strided_slice %25 {offsets = [32, 0], sizes = [8, 128], strides = [1, 1]} : vector<64x128xf32> to vector<8x128xf32>
    %34 = arith.maximumf %32, %33 : vector<8x128xf32>
    %35 = vector.extract_strided_slice %25 {offsets = [40, 0], sizes = [8, 128], strides = [1, 1]} : vector<64x128xf32> to vector<8x128xf32>
    %36 = arith.maximumf %34, %35 : vector<8x128xf32>
    %37 = vector.extract_strided_slice %25 {offsets = [48, 0], sizes = [8, 128], strides = [1, 1]} : vector<64x128xf32> to vector<8x128xf32>
    %38 = arith.maximumf %36, %37 : vector<8x128xf32>
    %39 = vector.extract_strided_slice %25 {offsets = [56, 0], sizes = [8, 128], strides = [1, 1]} : vector<64x128xf32> to vector<8x128xf32>
    %40 = arith.maximumf %38, %39 : vector<8x128xf32>
    %c0_i32 = arith.constant 0 : i32
    %41 = arith.cmpi eq, %arg2, %c0_i32 : i32
    %42 = arith.extui %41 : i1 to i32
    %c0_i32_20 = arith.constant 0 : i32
    %43 = arith.cmpi ne, %42, %c0_i32_20 : i32
    scf.if %43 {
      %c0_25 = arith.constant 0 : index
      %c0_26 = arith.constant 0 : index
      %50 = vector.load %arg11[%c0_25, %c0_26] : memref<8x128xf32, #tpu.memory_space<vmem>>, vector<8x128xf32>
      tpu.vector_store %arg11[%c0_25, %c0_26], %40 {strides = array<i32>} : memref<8x128xf32, #tpu.memory_space<vmem>>, vector<8x128xf32>,
    } else {
    }
    %c0_i32_21 = arith.constant 0 : i32
    %44 = arith.cmpi sgt, %arg2, %c0_i32_21 : i32
    %45 = arith.extui %44 : i1 to i32
    %c0_i32_22 = arith.constant 0 : i32
    %46 = arith.cmpi ne, %45, %c0_i32_22 : i32
    scf.if %46 {
      %c0_25 = arith.constant 0 : index
      %c0_26 = arith.constant 0 : index
      %50 = vector.load %arg11[%c0_25, %c0_26] : memref<8x128xf32, #tpu.memory_space<vmem>>, vector<8x128xf32>
      %51 = arith.maximumf %50, %40 : vector<8x128xf32>
      %c0_27 = arith.constant 0 : index
      %c0_28 = arith.constant 0 : index
      %52 = vector.load %arg11[%c0_27, %c0_28] : memref<8x128xf32, #tpu.memory_space<vmem>>, vector<8x128xf32>
      tpu.vector_store %arg11[%c0_27, %c0_28], %51 {strides = array<i32>} : memref<8x128xf32, #tpu.memory_space<vmem>>, vector<8x128xf32>,
    } else {
    }
    %c0_i32_23 = arith.constant 0 : i32
    %47 = arith.cmpi eq, %arg2, %c0_i32_23 : i32
    %48 = arith.extui %47 : i1 to i32
    %c0_i32_24 = arith.constant 0 : i32
    %49 = arith.cmpi ne, %48, %c0_i32_24 : i32
    scf.if %49 {
      %c0_25 = arith.constant 0 : index
      %c0_26 = arith.constant 0 : index
      %50 = vector.load %arg11[%c0_25, %c0_26] : memref<8x128xf32, #tpu.memory_space<vmem>>, vector<8x128xf32>
      %51 = arith.truncf %50 : vector<8x128xf32> to vector<8x128xbf16>
      %c0_27 = arith.constant 0 : index
      %c0_28 = arith.constant 0 : index
      %c0_29 = arith.constant 0 : index
      %52 = vector.load %arg10[%c0_27, %c0_28, %c0_29] : memref<1x8x128xbf16, #tpu.memory_space<vmem>>, vector<1x8x128xbf16>
      %53 = vector.shape_cast %52 : vector<1x8x128xbf16> to vector<8x128xbf16>
      %54 = vector.shape_cast %51 : vector<8x128xbf16> to vector<1x8x128xbf16>
      tpu.vector_store %arg10[%c0_27, %c0_28, %c0_29], %54 {strides = array<i32>} : memref<1x8x128xbf16, #tpu.memory_space<vmem>>, vector<1x8x128xbf16>,
    } else {
    }
    return
  }
  func.func @transform_0(%arg0: i32, %arg1: i32, %arg2: i32) -> (i32, i32, i32, i32) {
    %c0_i32 = arith.constant 0 : i32
    %c0_i32_0 = arith.constant 0 : i32
    return %arg0, %arg2, %arg1, %c0_i32 : i32, i32, i32, i32
  }
  func.func @transform_1(%arg0: i32, %arg1: i32, %arg2: i32) -> (i32, i32) {
    %c0_i32 = arith.constant 0 : i32
    %c0_i32_0 = arith.constant 0 : i32
    %c0_i32_1 = arith.constant 0 : i32
    return %c0_i32, %c0_i32_0 : i32, i32
  }
  func.func @transform_2(%arg0: i32, %arg1: i32, %arg2: i32) -> (i32, i32) {
    %c0_i32 = arith.constant 0 : i32
    %c0_i32_0 = arith.constant 0 : i32
    %c0_i32_1 = arith.constant 0 : i32
    return %c0_i32, %c0_i32_0 : i32, i32
  }
  func.func @transform_3(%arg0: i32, %arg1: i32, %arg2: i32) -> (i32, i32) {
    %c0_i32 = arith.constant 0 : i32
    %c0_i32_0 = arith.constant 0 : i32
    %c0_i32_1 = arith.constant 0 : i32
    return %c0_i32, %c0_i32_0 : i32, i32
  }
  func.func @transform_4(%arg0: i32, %arg1: i32, %arg2: i32) -> (i32, i32) {
    %c0_i32 = arith.constant 0 : i32
    %c0_i32_0 = arith.constant 0 : i32
    %c0_i32_1 = arith.constant 0 : i32
    return %c0_i32, %c0_i32_0 : i32, i32
  }
  func.func @transform_5(%arg0: i32, %arg1: i32, %arg2: i32) -> (i32, i32) {
    %c0_i32 = arith.constant 0 : i32
    %c0_i32_0 = arith.constant 0 : i32
    %c0_i32_1 = arith.constant 0 : i32
    return %c0_i32, %c0_i32_0 : i32, i32
  }
  func.func @transform_6(%arg0: i32, %arg1: i32, %arg2: i32) -> (i32, i32) {
    %c0_i32 = arith.constant 0 : i32
    %c0_i32_0 = arith.constant 0 : i32
    %c0_i32_1 = arith.constant 0 : i32
    return %c0_i32, %c0_i32_0 : i32, i32
  }
  func.func @transform_7(%arg0: i32, %arg1: i32, %arg2: i32) -> (i32, i32, i32) {
    %c0_i32 = arith.constant 0 : i32
    %c0_i32_0 = arith.constant 0 : i32
    return %arg0, %arg1, %c0_i32 : i32, i32, i32
  }
}

</mosaic_0001>

<bundles_post_ra>
// kernel: tpu_custom_call.1
= control target key start
LH: loop header
LB: loop body
LE: loop exit
PB: predicated region body
PF: predicated region fallthrough
CT: control target
= control target key end

     0   :  { %s1540_s0 = inlined_call_operand.hbm [shape: bf16[2,8,8,16], index: 0, kind: input, shape index: {}]   ;;  %s1541_s1 = inlined_call_operand.hbm [shape: bf16[16,128], index: 1, kind: input, shape index: {}]   ;;  %s1542_s2 = inlined_call_operand.vmem [shape: f32[1,128], index: 2, kind: input, shape index: {}]   ;;  %s1543_s3 = inlined_call_operand.hbm [shape: bf16[128,128], index: 3, kind: input, shape index: {}]   ;;  %s1544_s4 = inlined_call_operand.vmem [shape: f32[1,128], index: 4, kind: input, shape index: {}]   ;;  %s1545_s5 = inlined_call_operand.hbm [shape: bf16[128,128], index: 5, kind: input, shape index: {}]   ;;  %s1546_s6 = inlined_call_operand.vmem [shape: f32[1,128], index: 6, kind: input, shape index: {}]   ;;  %s1547_s7 = inlined_call_operand.hbm [shape: bf16[2,8,128], index: 7, kind: output, shape index: {}]  }
   0x1   :  { %1553 = sst [smem:[#allocation18_spill]] %s1541_s1 }
   0x2   :  { %1554 = sst [smem:[#allocation19_spill]] %s1543_s3 }
   0x3   :  { %1555 = sst [smem:[#allocation20_spill]] %s1545_s5 }
   0x4   :  { %12 = vsyncpa [#allocation4], 0 }
   0x5   :  { %14 = vsyncpa [#allocation4 + $0x1], 0 }
   0x6   :  { %15 = vsyncpa [#allocation7], 0 }
   0x7   :  { %16 = vsyncpa [#allocation10], 0 }
   0x8   :  { %17 = vsyncpa [#allocation5], 0 }
   0x9   :  { %19 = vsyncpa [#allocation5 + $0x1], 0  ;;  %s1345_s24 = smov 0   ;;  %s1347_s25 = smov 0  }
   0xa   :  { %s1349_s26 = smov 0   ;;  %s1351_s27 = smov 0  }
   0xb   :  { %s1353_s28 = smov 0   ;;  %s1355_s29 = smov 0  }
   0xc LB: > { %1556 = sst [smem:[#allocation16_spill]] %s1298_s29  ;;  %s844_s30 = sadd.s32 4294967295, %s1298_s29   ;;  %s1298_s29 = sphi %s1355_s29, %s25_s29   ;;  %s1294_s28 = sphi %s1353_s28, %s1577_s28   ;;  %s1290_s27 = sphi %s1351_s27, %s1576_s27   ;;  %s1286_s26 = sphi %s1349_s26, %s1575_s26   ;;  %s1282_s25 = sphi %s1347_s25, %s1574_s25   ;;  %s1278_s24 = sphi %s1345_s24, %s1573_s24  }
   0xd   : > { %s845_s8 = sadd.s32 4294967294, %s1298_s29   ;;  %p68_p0 = scmp.ne.s32.totalorder %s1282_s25, %s1278_s24 }
   0xe   : > { %p1379_p1 = scmp.eq.s32.totalorder %s844_s30, 0  ;;  %p1383_p2 = scmp.eq.s32.totalorder %s844_s30, 1 }
   0xf   : > { %p226_p3 = scmp.eq.s32.totalorder %s845_s8, 1  ;;  %p846_p5 = scmp.ge.s32.totalorder %s1298_s29, 1 }
  0x10   : > { %p1389_p4 = por %p1379_p1, %p68_p0  ;;  %p233_p7 = scmp.lt.s32.totalorder %s1298_s29, 3 }
  0x11   : > { %p1394_p6 = por %p226_p3, %p68_p0  ;;  %s1561_s1 = sld [smem:[#allocation18_spill]] }
  0x12   : > { %p1402_p8 = pnand %p846_p5, %p233_p7  ;;  %s1300_s17 = smov [#allocation6]  }
  0x13   : > { %s246_s18 = sshll.u32 %s1300_s17, 4  ;;  %p850_p11 = scmp.ge.s32.totalorder %s1298_s29, 2  ;;  %s247_s18 = int_to_ptr.vmem [resolvable:$true] %s246_s18 }
  0x14   : > { %p1006_p9 = pneg %p1402_p8  ;;  %s1564_s3 = sld [smem:[#allocation19_spill]] }
  0x15   : > { %s1548_s23 = smov 64   ;;  %s1549_s30 = smov 4  }
  0x16   : > { %p1410_p10 = pnand %p1006_p9, %p1379_p1  ;;  %s1303_s8 = smov [#allocation8]  }
  0x17   : > { %s244_s15 = sshll.u32 %s1561_s1, 4  ;;  %s263_s13 = sshll.u32 %s1303_s8, 4  ;;  %s245_s15 = int_to_ptr.hbm [resolvable:$true] %s244_s15  ;;  %s264_s13 = int_to_ptr.vmem [resolvable:$true] %s263_s13 }
  0x18   : > { %1009 = dma.hbm_to_vmem [thread:$0]  (!%p1410_p10), %s245_s15, 128, %s247_s18, [#allocation7], %s1548_s23, %s1548_s23, %s1549_s30  }
  0x19   : > { %s1565_s5 = sld [smem:[#allocation20_spill]]  ;;  %s1304_s21 = smov [#allocation9]  }
  0x1a   : > { %s261_s22 = sshll.u32 %s1564_s3, 4  ;;  %s280_s1 = sshll.u32 %s1304_s21, 4  ;;  %s262_s22 = int_to_ptr.hbm [resolvable:$true] %s261_s22  ;;  %s281_s1 = int_to_ptr.vmem [resolvable:$true] %s280_s1 }
  0x1b   : > { %1012 = dma.hbm_to_vmem [thread:$0]  (!%p1410_p10), %s262_s22, 1024, %s264_s13, [#allocation7], %s1548_s23, %s1548_s23, %s1549_s30  }
  0x1c   : > { %s44_s15 = sadd.s32 1, %s1294_s28  ;;  %s55_s18 = sadd.s32 1, %s1286_s26 }
  0x1d   : > { %p46_p12 = scmp.ge.s32.totalorder %s44_s15, 2  ;;  %p62_p13 = scmp.ne.s32.totalorder %s1286_s26, %s1282_s25 }
  0x1e   : > { %p63_p0 = scmp.eq.s32.totalorder %s1298_s29, 0  ;;  %p1027_p7 = scmp.lt.s32.totalorder %s1298_s29, 2 }
  0x1f   : > { %s278_s20 = sshll.u32 %s1565_s5, 4  ;;  %s1579_s15 = smov (%p46_p12, %s44_s15), 0  ;;  %s279_s20 = int_to_ptr.hbm [resolvable:$true] %s278_s20 }
  0x20   : > { %1015 = dma.hbm_to_vmem [thread:$0]  (!%p1410_p10), %s279_s20, 1024, %s281_s1, [#allocation10], %s1548_s23, %s1548_s23, %s1549_s30  }
  0x21   : > { %1566 = sst [smem:[#allocation17_spill]] %s1579_s15  ;;  %p1443_p3 = por %p63_p0, %p62_p13 }
  0x22   : > { %p1449_p5 = por %p1383_p2, %p62_p13  ;;  %s48_s8 = ssub.s32 %s1294_s28, %s1579_s15 }
  0x23   : > { %p53_p9 = scmp.eq.s32.totalorder %s48_s8, 0  ;;  %s297_s1 = sand.u32 1, %s1286_s26  }
  0x24   : > { %s851_s13 = sshll.u32 %s297_s1, 5  ;;  %s952_s17 = sshll.u32 %s1294_s28, 5 }
  0x25   : > { %s1458_s14 = scalar_select %p53_p9, %s1286_s26, %s55_s18  }
  0x26   : > { %s309_s23 = scalar_lea.hbm %s1540_s0, %s952_s17  ;;  %s301_s30 = scalar_lea.vmem [#allocation3], %s851_s13 }
  0x27   : > { %s312_s3 = sshll.u32 %s301_s30, 4  ;;  %s310_s10 = sshll.u32 %s309_s23, 4  ;;  %s313_s3 = int_to_ptr.vmem [resolvable:$true] %s312_s3  ;;  %s311_s10 = int_to_ptr.hbm [resolvable:$true] %s310_s10 }
  0x28   : > { %p1017_p2 = pnand %p1027_p7, %p1443_p3  ;;  %s298_s5 = scalar_lea.sflag [#allocation4], %s297_s1 }
  0x29   : > { %s1569_s15 = smov 4   ;;  %s1570_s29 = smov 64  }
  0x2a   : > { %1019 = dma.hbm_to_vmem [thread:$0]  (!%p1017_p2), %s311_s10, 512, %s313_s3, %s298_s5, %s1570_s29, %s1570_s29, %s1569_s15  }
  0x2b   : > { %324 = sbr.rel (%p1402_p8) target bundleno = 542 (0x21e), region = 48  ;;  %s1472_s18 = sand.u32 (!%p1402_p8), 1, %s1282_s25  }
  0x2c   : > { %s855_s30 = sshll.u32 (!%p1402_p8), %s1472_s18, 5  ;;  %s327_s23 = scalar_lea.sflag (!%p1402_p8), [#allocation4], %s1472_s18 }
  0x2d   : > { %s330_s8 = scalar_lea.vmem (!%p1402_p8), [#allocation3], %s855_s30 }
  0x30   : > { %1261 = dma.done.wait (%p1389_p4), %s327_s23, 512  }
  0x31   : > { %1263 = vsyncadd (%p1389_p4), %s327_s23, 4294966784 }
  0x32   : > { %1265 = dma.done.wait (%p1379_p1), [#allocation7], 1152  }
  0x33   : > { %1267 = vsyncadd (%p1379_p1), [#allocation7], 4294966144 }
  0x34   : > { %1269 = dma.done.wait (%p1379_p1), [#allocation10], 1024  }
  0x35   : > { %1271 = vsyncadd (%p1379_p1), [#allocation10], 4294966272  ;;  %v957_v0 = vld [vmem:[#allocation6] sm:$0xff]  ;;  %vm419_vm0 = vcmask 130048   ;;  %v954_v2 = vld [vmem:[%s330_s8 + $0x8] sm:$0xff]  ;;  %s859_s15 = sshll.u32 %s1472_s18, 2 }
  0x36   : > { %v953_v1 = vld [vmem:[%s330_s8] sm:$0xff]  ;;  %439 = vmatpush.bf16.msra.mxu0 %v957_v0  ;;  %v964_v4 = vld [vmem:[#allocation8 + $0x30] sm:$0xff]  ;;  %v963_v5 = vld [vmem:[#allocation8 + $0x28] sm:$0xff]  ;;  %s949_s22 = sshll.u32 %s1290_s27, 2  ;;  %s376_s20 = scalar_lea.vmem [#allocation11], %s859_s15 }
  0x37   : > { %v965_v3 = vld [vmem:[#allocation8 + $0x38] sm:$0xff]  ;;  %v962_v6 = vld [vmem:[#allocation8 + $0x20] sm:$0xff]  ;;  %v955_v7 = vld [vmem:[%s330_s8 + $0x10] sm:$0xff]  ;;  %s724_s17 = scalar_lea.hbm %s1547_s7, %s949_s22  ;;  %s726_s21 = sshll.u32 %s376_s20, 4  ;;  %s727_s21 = int_to_ptr.vmem [resolvable:$true] %s726_s21 }
  0x38   : > { %541 = vmatpush.bf16.msra.mxu1 %v965_v3  ;;  %974 = vmatpush.bf16.msra.mxu3 %v965_v3  ;;  %v956_v8 = vld [vmem:[%s330_s8 + $0x18] sm:$0xff]  ;;  %v961_v9 = vld [vmem:[#allocation8 + $0x18] sm:$0xff]  ;;  %v959_v11 = vld [vmem:[#allocation8 + $0x8] sm:$0xff]  ;;  %s728_s10 = sshll.u32 %s724_s17, 4  ;;  %s713_s27 = scalar_lea.sflag [#allocation5], %s1472_s18  ;;  %s729_s10 = int_to_ptr.hbm [resolvable:$true] %s728_s10 }
  0x39   : > { %880 = vmatmul.msk.bf16.vlgmr.msra.gmra.mxu0 %vm419_vm0, %v953_v1  ;;  %v960_v10 = vld [vmem:[#allocation8 + $0x10] sm:$0xff]  ;;  %v958_v12 = vld [vmem:[#allocation8] sm:$0xff]  ;;  %v1085_v14 = vld [vmem:[%s1542_s2] ss:$0 sm:$0xff]  ;;  %s1222_s30 = sshra.s32 %s729_s10, 4  ;;  %s1228_s5 = scalar_lea.hbm %s1547_s7, 8  ;;  %s1223_s30 = int_to_ptr.hbm [resolvable:$true] %s1222_s30 }
  0x3a   : > { %v973_v28 = vld [vmem:[#allocation9 + $0x38] sm:$0xff]  ;;  %v972_v30 = vld [vmem:[#allocation9 + $0x30] sm:$0xff]  ;;  %v971_v31 = vld [vmem:[#allocation9 + $0x28] sm:$0xff]  ;;  %s1224_s23 = scalar_lea.hbm %s1223_s30, 4  ;;  %p1229_p10 = scmp.lt.s32.totalorder %s1223_s30, %s1547_s7 }
  0x3b   : > { %982 = vmatpush.bf16.msra.mxu2 %v973_v28  ;;  %v970_v35 = vld [vmem:[#allocation9 + $0x20] sm:$0xff]  ;;  %v969_v46 = vld [vmem:[#allocation9 + $0x18] sm:$0xff]  ;;  %v968_v47 = vld [vmem:[#allocation9 + $0x10] sm:$0xff]  ;;  %p1225_p1 = scmp.ne.s32.totalorder %s1223_s30, %s1224_s23  ;;  %p1230_p12 = scmp.lt.s32.totalorder %s1228_s5, %s1224_s23 }
  0x3c   : > { %542 = vmatpush.bf16.msra.mxu1 %v964_v4  ;;  %975 = vmatpush.bf16.msra.mxu3 %v964_v4  ;;  %v967_v48 = vld [vmem:[#allocation9 + $0x8] sm:$0xff]  ;;  %v966_v49 = vld [vmem:[#allocation9] sm:$0xff]  ;;  %v1086_v51 = vld [vmem:[%s1544_s4] ss:$0 sm:$0xff] }
  0x3d   : > { %p1226_p4 = pnand %p1225_p1, %p1449_p5  ;;  %p1231_p13 = por %p1230_p12, %p1229_p10 }
  0x3f   : > { %983 = vmatpush.bf16.msra.mxu2 %v972_v30  ;;  %p1227_p8 = pneg %p1226_p4 }
  0x40   : > { %543 = vmatpush.bf16.msra.mxu1 %v963_v5  ;;  %976 = vmatpush.bf16.msra.mxu3 %v963_v5 }
  0x41   : > { %p1232_p0 = pnand %p1231_p13, %p1227_p8 }
  0x43   : > { %984 = vmatpush.bf16.msra.mxu2 %v971_v31 }
  0x44   : > { %544 = vmatpush.bf16.msra.mxu1 %v962_v6  ;;  %977 = vmatpush.bf16.msra.mxu3 %v962_v6 }
  0x47   : > { %985 = vmatpush.bf16.msra.mxu2 %v970_v35 }
  0x48   : > { %545 = vmatpush.bf16.msra.mxu1 %v961_v9  ;;  %978 = vmatpush.bf16.msra.mxu3 %v961_v9 }
  0x49   : > { %881 = vmatmul.msk.bf16.gmra.mxu0 %vm419_vm0, %v954_v2 }
  0x4b   : > { %986 = vmatpush.bf16.msra.mxu2 %v969_v46 }
  0x4c   : > { %546 = vmatpush.bf16.msra.mxu1 %v960_v10  ;;  %979 = vmatpush.bf16.msra.mxu3 %v960_v10 }
  0x4f   : > { %987 = vmatpush.bf16.msra.mxu2 %v968_v47 }
  0x50   : > { %547 = vmatpush.bf16.msra.mxu1 %v959_v11  ;;  %980 = vmatpush.bf16.msra.mxu3 %v959_v11 }
  0x53   : > { %988 = vmatpush.bf16.msra.mxu2 %v967_v48 }
  0x54   : > { %548 = vmatpush.bf16.msra.mxu1 %v958_v12  ;;  %981 = vmatpush.bf16.msra.mxu3 %v958_v12 }
  0x57   : > { %989 = vmatpush.bf16.msra.mxu2 %v966_v49 }
  0x58   : > { %650 = vmatpush.bf16.msrb.mxu1 %v973_v28 }
  0x59   : > { %882 = vmatmul.msk.bf16.gmra.mxu0 %vm419_vm0, %v955_v7 }
  0x5c   : > { %651 = vmatpush.bf16.msrb.mxu1 %v972_v30 }
  0x60   : > { %652 = vmatpush.bf16.msrb.mxu1 %v971_v31 }
  0x64   : > { %653 = vmatpush.bf16.msrb.mxu1 %v970_v35 }
  0x68   : > { %654 = vmatpush.bf16.msrb.mxu1 %v969_v46 }
  0x69   : > { %883 = vmatmul.msk.bf16.gmra.mxu0 %vm419_vm0, %v956_v8 }
  0x6c   : > { %655 = vmatpush.bf16.msrb.mxu1 %v968_v47 }
  0x70   : > { %656 = vmatpush.bf16.msrb.mxu1 %v967_v48 }
  0x74   : > { %657 = vmatpush.bf16.msrb.mxu1 %v966_v49 }
  0xb6   : > { %v441_v13 = vpop.f32.mrf.mxu0 }
  0xb7   : > { %v442_v15 = vadd.f32 %v1085_v14, %v441_v13 }
  0xb9   : > { %v461_v18 = vmax.f32 %v442_v15, 0.0 }
  0xbe   : > { %v443_v16 = vpop.f32.mrf.mxu0 }
  0xbf   : > { %v444_v17 = vadd.f32 %v1085_v14, %v443_v16 }
  0xc1   : > { %v462_v19 = vmax.f32 %v444_v17, 0.0 }
  0xc3   : > { %v469_v20 = vpack.c.bf16 %v462_v19, %v461_v18 }
  0xc5   : > { %549 = vmatmul.bf16.vlgmr.msra.gmra.mxu1 %v469_v20  ;;  %v1087_v20 = vld [vmem:[%s1546_s6] ss:$0 sm:$0xff] }
  0xc6   : > { %v446_v21 = vpop.f32.mrf.mxu0 }
  0xc7   : > { %v447_v22 = vadd.f32 %v1085_v14, %v446_v21 }
  0xc9   : > { %v463_v25 = vmax.f32 %v447_v22, 0.0 }
  0xce   : > { %v448_v23 = vpop.f32.mrf.mxu0 }
  0xcf   : > { %v449_v24 = vadd.f32 %v1085_v14, %v448_v23 }
  0xd1   : > { %v464_v26 = vmax.f32 %v449_v24, 0.0 }
  0xd3   : > { %v470_v27 = vpack.c.bf16 %v464_v26, %v463_v25 }
  0xd5   : > { %554 = vmatmul.bf16.vlgmr.msra.gmra.mxu3 %v470_v27 }
  0xd6   : > { %v451_v29 = vpop.f32.mrf.mxu0 }
  0xd7   : > { %v452_v32 = vadd.f32 %v1085_v14, %v451_v29 }
  0xd9   : > { %v465_v36 = vmax.f32 %v452_v32, 0.0 }
  0xde   : > { %v453_v33 = vpop.f32.mrf.mxu0 }
  0xdf   : > { %v454_v34 = vadd.f32 %v1085_v14, %v453_v33 }
  0xe1   : > { %v466_v37 = vmax.f32 %v454_v34, 0.0 }
  0xe3   : > { %v471_v38 = vpack.c.bf16 %v466_v37, %v465_v36 }
  0xe5   : > { %559 = vmatmul.bf16.gmra.mxu3 %v471_v38 }
  0xe6   : > { %v456_v39 = vpop.f32.mrf.mxu0 }
  0xe7   : > { %v457_v40 = vadd.f32 %v1085_v14, %v456_v39 }
  0xe9   : > { %v467_v43 = vmax.f32 %v457_v40, 0.0 }
  0xee   : > { %v458_v41 = vpop.f32.mrf.mxu0 }
  0xef   : > { %v459_v42 = vadd.f32 %v1085_v14, %v458_v41 }
  0xf1   : > { %v468_v44 = vmax.f32 %v459_v42, 0.0 }
  0xf3   : > { %v472_v45 = vpack.c.bf16 %v468_v44, %v467_v43 }
  0xf5   : > { %564 = vmatmul.bf16.gmra.mxu3 %v472_v45 }
 0x142   : > { %v550_v50 = vpop.f32.mrf.mxu1 }
 0x143   : > { %v551_v52 = vadd.f32 %v1086_v51, %v550_v50 }
 0x145   : > { %v570_v55 = vmax.f32 %v551_v52, 0.0 }
 0x14a   : > { %v552_v53 = vpop.f32.mrf.mxu1 }
 0x14b   : > { %v553_v54 = vadd.f32 %v1086_v51, %v552_v53 }
 0x14d   : > { %v571_v56 = vmax.f32 %v553_v54, 0.0 }
 0x14f   : > { %v578_v57 = vpack.c.bf16 %v571_v56, %v570_v55 }
 0x151   : > { %658 = vmatmul.bf16.vlgmr.msrb.gmra.mxu1 %v578_v57 }
 0x158   : > { %v555_v58 = vpop.f32.mrf.mxu3 }
 0x159   : > { %v556_v59 = vadd.f32 %v1086_v51, %v555_v58 }
 0x15b   : > { %v572_v62 = vmax.f32 %v556_v59, 0.0 }
 0x160   : > { %v557_v60 = vpop.f32.mrf.mxu3 }
 0x161   : > { %v558_v61 = vadd.f32 %v1086_v51, %v557_v60 }
 0x163   : > { %v573_v63 = vmax.f32 %v558_v61, 0.0 }
 0x165   : > { %v579_v0 = vpack.c.bf16 %v573_v63, %v572_v62 }
 0x167   : > { %663 = vmatmul.bf16.vlgmr.msra.gmra.mxu2 %v579_v0 }
 0x168   : > { %v560_v1 = vpop.f32.mrf.mxu3 }
 0x169   : > { %v561_v2 = vadd.f32 %v1086_v51, %v560_v1 }
 0x16b   : > { %v574_v5 = vmax.f32 %v561_v2, 0.0 }
 0x170   : > { %v562_v3 = vpop.f32.mrf.mxu3 }
 0x171   : > { %v563_v4 = vadd.f32 %v1086_v51, %v562_v3 }
 0x173   : > { %v575_v6 = vmax.f32 %v563_v4, 0.0 }
 0x175   : > { %v580_v7 = vpack.c.bf16 %v575_v6, %v574_v5 }
 0x177   : > { %668 = vmatmul.bf16.gmra.mxu2 %v580_v7 }
 0x178   : > { %v565_v8 = vpop.f32.mrf.mxu3 }
 0x179   : > { %v566_v9 = vadd.f32 %v1086_v51, %v565_v8 }
 0x17b   : > { %v576_v12 = vmax.f32 %v566_v9, 0.0 }
 0x180   : > { %v567_v10 = vpop.f32.mrf.mxu3 }
 0x181   : > { %v568_v11 = vadd.f32 %v1086_v51, %v567_v10 }
 0x183   : > { %v577_v13 = vmax.f32 %v568_v11, 0.0 }
 0x185   : > { %v581_v14 = vpack.c.bf16 %v577_v13, %v576_v12 }
 0x187   : > { %673 = vmatmul.bf16.gmra.mxu2 %v581_v14 }
 0x1ce   : > { %v659_v17 = vpop.f32.mrf.mxu1 }
 0x1cf   : > { %v660_v23 = vadd.f32 %v1087_v20, %v659_v17 }
 0x1d1   : > { %v679_v27 = vmax.f32 %v660_v23, 0.0 }
 0x1d6   : > { %v661_v19 = vpop.f32.mrf.mxu1 }
 0x1d7   : > { %v662_v22 = vadd.f32 %v1087_v20, %v661_v19 }
 0x1d9   : > { %v680_v25 = vmax.f32 %v662_v22, 0.0 }
 0x1db   : > { %v687_v31 = vmax.f32 %v679_v27, %v680_v25 }
 0x1ea   : > { %v664_v15 = vpop.f32.mrf.mxu2 }
 0x1eb   : > { %v665_v24 = vadd.f32 %v1087_v20, %v664_v15 }
 0x1ed   : > { %v681_v28 = vmax.f32 %v665_v24, 0.0 }
 0x1ef   : > { %v688_v34 = vmax.f32 %v687_v31, %v681_v28 }
 0x1f2   : > { %v666_v16 = vpop.f32.mrf.mxu2 }
 0x1f3   : > { %v667_v26 = vadd.f32 %v1087_v20, %v666_v16 }
 0x1f5   : > { %v682_v32 = vmax.f32 %v667_v26, 0.0 }
 0x1f7   : > { %v689_v37 = vmax.f32 %v688_v34, %v682_v32 }
 0x1fa   : > { %v669_v18 = vpop.f32.mrf.mxu2 }
 0x1fb   : > { %v670_v29 = vadd.f32 %v1087_v20, %v669_v18 }
 0x1fd   : > { %v683_v35 = vmax.f32 %v670_v29, 0.0 }
 0x1ff   : > { %v690_v39 = vmax.f32 %v689_v37, %v683_v35 }
 0x202   : > { %v671_v21 = vpop.f32.mrf.mxu2 }
 0x203   : > { %v672_v33 = vadd.f32 %v1087_v20, %v671_v21 }
 0x205   : > { %v684_v38 = vmax.f32 %v672_v33, 0.0 }
 0x207   : > { %v691_v42 = vmax.f32 %v690_v39, %v684_v38 }
 0x20a   : > { %v674_v30 = vpop.f32.mrf.mxu2 }
 0x20b   : > { %v675_v36 = vadd.f32 %v1087_v20, %v674_v30 }
 0x20d   : > { %v685_v40 = vmax.f32 %v675_v36, 0.0 }
 0x20f   : > { %v692_v44 = vmax.f32 %v691_v42, %v685_v40 }
 0x212   : > { %v676_v41 = vpop.f32.mrf.mxu2 }
 0x213   : > { %v677_v43 = vadd.f32 %v1087_v20, %v676_v41 }
 0x215   : > { %v686_v45 = vmax.f32 %v677_v43, 0.0 }
 0x217   : > { %v693_v46 = vmax.f32 %v692_v44, %v686_v45 }
 0x219   : > { %v710_v47 = vpack.c.bf16 %v693_v46, %v693_v46 }
 0x21b   : > { %711 = vst [vmem:[%s376_s20] sm:$0xf] %v710_v47 }
 0x21c   : > { %1235 = shalt.err (!%p1232_p0)
}
 0x21d   : > { %1004 = dma.vmem_to_hbm [thread:$0]  (%p1449_p5), %s727_s21, 64, %s729_s10, %s713_s27  }
 0x21e PF: > { %s1571_s18 = sld [smem:[#allocation16_spill]]  ;;  %s740_s11 = sand.u32 1, %s1278_s24  }
 0x21f   : > { %p1021_p3 = pnand %p850_p11, %p1394_p6  ;;  %s741_s16 = scalar_lea.sflag [#allocation5], %s740_s11 }
 0x221   : > { %p1022_p7 = pneg %p1021_p3 }
 0x223   : > { %1273 = dma.done.wait (%p1022_p7), %s741_s16, 64  }
 0x224   : > { %1275 = vsyncadd (%p1022_p7), %s741_s16, 4294967232  ;;  %s25_s29 = sadd.s32 1, %s1571_s18   ;;  %s1572_s19 = sld [smem:[#allocation17_spill]] }
 0x225   : > { %p22_p9 = scmp.ge.s32.totalorder %s25_s29, 4   ;;  %s1573_s24 = smov %s1282_s25 }
 0x226   : > { %s1574_s25 = smov %s1286_s26  ;;  %s1575_s26 = smov %s1458_s14 }
 0x227   : > { %s1576_s27 = smov %s1294_s28  ;;  %24 = sbr.rel (!%p22_p9) target bundleno = 12 (0xc), region = 117 }
 0x22a   : > { %s1577_s28 = smov %s1572_s19 }
 0x22c   :  { %747 = vsyncpa [#allocation4], 1 }
 0x22d   :  { %749 = vsyncpa [#allocation4 + $0x1], 1 }
 0x22e   :  { %750 = vsyncpa [#allocation7], 1 }
 0x22f   :  { %751 = vsyncpa [#allocation10], 1 }
 0x230   :  { %752 = vsyncpa [#allocation5], 1 }
 0x231   :  { %754 = vsyncpa [#allocation5 + $0x1], 1 }

// kernel: tpu_custom_call.1
= control target key start
LH: loop header
LB: loop body
LE: loop exit
PB: predicated region body
PF: predicated region fallthrough
CT: control target
= control target key end

     0   :  { %s1540_s0 = inlined_call_operand.hbm [shape: bf16[2,8,8,16], index: 0, kind: input, shape index: {}]   ;;  %s1541_s1 = inlined_call_operand.hbm [shape: bf16[16,128], index: 1, kind: input, shape index: {}]   ;;  %s1542_s2 = inlined_call_operand.vmem [shape: f32[1,128], index: 2, kind: input, shape index: {}]   ;;  %s1543_s3 = inlined_call_operand.hbm [shape: bf16[128,128], index: 3, kind: input, shape index: {}]   ;;  %s1544_s4 = inlined_call_operand.vmem [shape: f32[1,128], index: 4, kind: input, shape index: {}]   ;;  %s1545_s5 = inlined_call_operand.hbm [shape: bf16[128,128], index: 5, kind: input, shape index: {}]   ;;  %s1546_s6 = inlined_call_operand.vmem [shape: f32[1,128], index: 6, kind: input, shape index: {}]   ;;  %s1547_s7 = inlined_call_operand.hbm [shape: bf16[2,8,128], index: 7, kind: output, shape index: {}]  }
   0x1   :  { %1553 = sst [smem:[#allocation18_spill]] %s1541_s1 }
   0x2   :  { %1554 = sst [smem:[#allocation19_spill]] %s1543_s3 }
   0x3   :  { %1555 = sst [smem:[#allocation20_spill]] %s1545_s5 }
   0x4   :  { %12 = vsyncpa [#allocation4], 0 }
   0x5   :  { %14 = vsyncpa [#allocation4 + $0x1], 0 }
   0x6   :  { %15 = vsyncpa [#allocation7], 0 }
   0x7   :  { %16 = vsyncpa [#allocation10], 0 }
   0x8   :  { %17 = vsyncpa [#allocation5], 0 }
   0x9   :  { %19 = vsyncpa [#allocation5 + $0x1], 0  ;;  %s1345_s24 = smov 0   ;;  %s1347_s25 = smov 0  }
   0xa   :  { %s1349_s26 = smov 0   ;;  %s1351_s27 = smov 0  }
   0xb   :  { %s1353_s28 = smov 0   ;;  %s1355_s29 = smov 0  }
   0xc LB: > { %1556 = sst [smem:[#allocation16_spill]] %s1298_s29  ;;  %s844_s30 = sadd.s32 4294967295, %s1298_s29   ;;  %s1298_s29 = sphi %s1355_s29, %s25_s29   ;;  %s1294_s28 = sphi %s1353_s28, %s1577_s28   ;;  %s1290_s27 = sphi %s1351_s27, %s1576_s27   ;;  %s1286_s26 = sphi %s1349_s26, %s1575_s26   ;;  %s1282_s25 = sphi %s1347_s25, %s1574_s25   ;;  %s1278_s24 = sphi %s1345_s24, %s1573_s24  }
   0xd   : > { %s845_s8 = sadd.s32 4294967294, %s1298_s29   ;;  %p68_p0 = scmp.ne.s32.totalorder %s1282_s25, %s1278_s24 }
   0xe   : > { %p1379_p1 = scmp.eq.s32.totalorder %s844_s30, 0  ;;  %p1383_p2 = scmp.eq.s32.totalorder %s844_s30, 1 }
   0xf   : > { %p226_p3 = scmp.eq.s32.totalorder %s845_s8, 1  ;;  %p846_p5 = scmp.ge.s32.totalorder %s1298_s29, 1 }
  0x10   : > { %p1389_p4 = por %p1379_p1, %p68_p0  ;;  %p233_p7 = scmp.lt.s32.totalorder %s1298_s29, 3 }
  0x11   : > { %p1394_p6 = por %p226_p3, %p68_p0  ;;  %s1561_s1 = sld [smem:[#allocation18_spill]] }
  0x12   : > { %p1402_p8 = pnand %p846_p5, %p233_p7  ;;  %s1300_s17 = smov [#allocation6]  }
  0x13   : > { %s246_s18 = sshll.u32 %s1300_s17, 4  ;;  %p850_p11 = scmp.ge.s32.totalorder %s1298_s29, 2  ;;  %s247_s18 = int_to_ptr.vmem [resolvable:$true] %s246_s18 }
  0x14   : > { %p1006_p9 = pneg %p1402_p8  ;;  %s1564_s3 = sld [smem:[#allocation19_spill]] }
  0x15   : > { %s1548_s23 = smov 64   ;;  %s1549_s30 = smov 4  }
  0x16   : > { %p1410_p10 = pnand %p1006_p9, %p1379_p1  ;;  %s1303_s8 = smov [#allocation8]  }
  0x17   : > { %s244_s15 = sshll.u32 %s1561_s1, 4  ;;  %s263_s13 = sshll.u32 %s1303_s8, 4  ;;  %s245_s15 = int_to_ptr.hbm [resolvable:$true] %s244_s15  ;;  %s264_s13 = int_to_ptr.vmem [resolvable:$true] %s263_s13 }
  0x18   : > { %1009 = dma.hbm_to_vmem [thread:$0]  (!%p1410_p10), %s245_s15, 128, %s247_s18, [#allocation7], %s1548_s23, %s1548_s23, %s1549_s30  }
  0x19   : > { %s1565_s5 = sld [smem:[#allocation20_spill]]  ;;  %s1304_s21 = smov [#allocation9]  }
  0x1a   : > { %s261_s22 = sshll.u32 %s1564_s3, 4  ;;  %s280_s1 = sshll.u32 %s1304_s21, 4  ;;  %s262_s22 = int_to_ptr.hbm [resolvable:$true] %s261_s22  ;;  %s281_s1 = int_to_ptr.vmem [resolvable:$true] %s280_s1 }
  0x1b   : > { %1012 = dma.hbm_to_vmem [thread:$0]  (!%p1410_p10), %s262_s22, 1024, %s264_s13, [#allocation7], %s1548_s23, %s1548_s23, %s1549_s30  }
  0x1c   : > { %s44_s15 = sadd.s32 1, %s1294_s28  ;;  %s55_s18 = sadd.s32 1, %s1286_s26 }
  0x1d   : > { %p46_p12 = scmp.ge.s32.totalorder %s44_s15, 2  ;;  %p62_p13 = scmp.ne.s32.totalorder %s1286_s26, %s1282_s25 }
  0x1e   : > { %p63_p0 = scmp.eq.s32.totalorder %s1298_s29, 0  ;;  %p1027_p7 = scmp.lt.s32.totalorder %s1298_s29, 2 }
  0x1f   : > { %s278_s20 = sshll.u32 %s1565_s5, 4  ;;  %s1579_s15 = smov (%p46_p12, %s44_s15), 0  ;;  %s279_s20 = int_to_ptr.hbm [resolvable:$true] %s278_s20 }
  0x20   : > { %1015 = dma.hbm_to_vmem [thread:$0]  (!%p1410_p10), %s279_s20, 1024, %s281_s1, [#allocation10], %s1548_s23, %s1548_s23, %s1549_s30  }
  0x21   : > { %1566 = sst [smem:[#allocation17_spill]] %s1579_s15  ;;  %p1443_p3 = por %p63_p0, %p62_p13 }
  0x22   : > { %p1449_p5 = por %p1383_p2, %p62_p13  ;;  %s48_s8 = ssub.s32 %s1294_s28, %s1579_s15 }
  0x23   : > { %p53_p9 = scmp.eq.s32.totalorder %s48_s8, 0  ;;  %s297_s1 = sand.u32 1, %s1286_s26  }
  0x24   : > { %s851_s13 = sshll.u32 %s297_s1, 5  ;;  %s952_s17 = sshll.u32 %s1294_s28, 5 }
  0x25   : > { %s1458_s14 = scalar_select %p53_p9, %s1286_s26, %s55_s18  }
  0x26   : > { %s309_s23 = scalar_lea.hbm %s1540_s0, %s952_s17  ;;  %s301_s30 = scalar_lea.vmem [#allocation3], %s851_s13 }
  0x27   : > { %s312_s3 = sshll.u32 %s301_s30, 4  ;;  %s310_s10 = sshll.u32 %s309_s23, 4  ;;  %s313_s3 = int_to_ptr.vmem [resolvable:$true] %s312_s3  ;;  %s311_s10 = int_to_ptr.hbm [resolvable:$true] %s310_s10 }
  0x28   : > { %p1017_p2 = pnand %p1027_p7, %p1443_p3  ;;  %s298_s5 = scalar_lea.sflag [#allocation4], %s297_s1 }
  0x29   : > { %s1569_s15 = smov 4   ;;  %s1570_s29 = smov 64  }
  0x2a   : > { %1019 = dma.hbm_to_vmem [thread:$0]  (!%p1017_p2), %s311_s10, 512, %s313_s3, %s298_s5, %s1570_s29, %s1570_s29, %s1569_s15  }
  0x2b   : > { %324 = sbr.rel (%p1402_p8) target bundleno = 542 (0x21e), region = 48  ;;  %s1472_s18 = sand.u32 (!%p1402_p8), 1, %s1282_s25  }
  0x2c   : > { %s855_s30 = sshll.u32 (!%p1402_p8), %s1472_s18, 5  ;;  %s327_s23 = scalar_lea.sflag (!%p1402_p8), [#allocation4], %s1472_s18 }
  0x2d   : > { %s330_s8 = scalar_lea.vmem (!%p1402_p8), [#allocation3], %s855_s30 }
  0x30   : > { %1261 = dma.done.wait (%p1389_p4), %s327_s23, 512  }
  0x31   : > { %1263 = vsyncadd (%p1389_p4), %s327_s23, 4294966784 }
  0x32   : > { %1265 = dma.done.wait (%p1379_p1), [#allocation7], 1152  }
  0x33   : > { %1267 = vsyncadd (%p1379_p1), [#allocation7], 4294966144 }
  0x34   : > { %1269 = dma.done.wait (%p1379_p1), [#allocation10], 1024  }
  0x35   : > { %1271 = vsyncadd (%p1379_p1), [#allocation10], 4294966272  ;;  %v957_v0 = vld [vmem:[#allocation6] sm:$0xff]  ;;  %vm419_vm0 = vcmask 130048   ;;  %v954_v2 = vld [vmem:[%s330_s8 + $0x8] sm:$0xff]  ;;  %s859_s15 = sshll.u32 %s1472_s18, 2 }
  0x36   : > { %v953_v1 = vld [vmem:[%s330_s8] sm:$0xff]  ;;  %439 = vmatpush.bf16.msra.mxu0 %v957_v0  ;;  %v964_v4 = vld [vmem:[#allocation8 + $0x30] sm:$0xff]  ;;  %v963_v5 = vld [vmem:[#allocation8 + $0x28] sm:$0xff]  ;;  %s949_s22 = sshll.u32 %s1290_s27, 2  ;;  %s376_s20 = scalar_lea.vmem [#allocation11], %s859_s15 }
  0x37   : > { %v965_v3 = vld [vmem:[#allocation8 + $0x38] sm:$0xff]  ;;  %v962_v6 = vld [vmem:[#allocation8 + $0x20] sm:$0xff]  ;;  %v955_v7 = vld [vmem:[%s330_s8 + $0x10] sm:$0xff]  ;;  %s724_s17 = scalar_lea.hbm %s1547_s7, %s949_s22  ;;  %s726_s21 = sshll.u32 %s376_s20, 4  ;;  %s727_s21 = int_to_ptr.vmem [resolvable:$true] %s726_s21 }
  0x38   : > { %541 = vmatpush.bf16.msra.mxu1 %v965_v3  ;;  %974 = vmatpush.bf16.msra.mxu3 %v965_v3  ;;  %v956_v8 = vld [vmem:[%s330_s8 + $0x18] sm:$0xff]  ;;  %v961_v9 = vld [vmem:[#allocation8 + $0x18] sm:$0xff]  ;;  %v959_v11 = vld [vmem:[#allocation8 + $0x8] sm:$0xff]  ;;  %s728_s10 = sshll.u32 %s724_s17, 4  ;;  %s713_s27 = scalar_lea.sflag [#allocation5], %s1472_s18  ;;  %s729_s10 = int_to_ptr.hbm [resolvable:$true] %s728_s10 }
  0x39   : > { %880 = vmatmul.msk.bf16.vlgmr.msra.gmra.mxu0 %vm419_vm0, %v953_v1  ;;  %v960_v10 = vld [vmem:[#allocation8 + $0x10] sm:$0xff]  ;;  %v958_v12 = vld [vmem:[#allocation8] sm:$0xff]  ;;  %v1085_v14 = vld [vmem:[%s1542_s2] ss:$0 sm:$0xff]  ;;  %s1222_s30 = sshra.s32 %s729_s10, 4  ;;  %s1228_s5 = scalar_lea.hbm %s1547_s7, 8  ;;  %s1223_s30 = int_to_ptr.hbm [resolvable:$true] %s1222_s30 }
  0x3a   : > { %v973_v28 = vld [vmem:[#allocation9 + $0x38] sm:$0xff]  ;;  %v972_v30 = vld [vmem:[#allocation9 + $0x30] sm:$0xff]  ;;  %v971_v31 = vld [vmem:[#allocation9 + $0x28] sm:$0xff]  ;;  %s1224_s23 = scalar_lea.hbm %s1223_s30, 4  ;;  %p1229_p10 = scmp.lt.s32.totalorder %s1223_s30, %s1547_s7 }
  0x3b   : > { %982 = vmatpush.bf16.msra.mxu2 %v973_v28  ;;  %v970_v35 = vld [vmem:[#allocation9 + $0x20] sm:$0xff]  ;;  %v969_v46 = vld [vmem:[#allocation9 + $0x18] sm:$0xff]  ;;  %v968_v47 = vld [vmem:[#allocation9 + $0x10] sm:$0xff]  ;;  %p1225_p1 = scmp.ne.s32.totalorder %s1223_s30, %s1224_s23  ;;  %p1230_p12 = scmp.lt.s32.totalorder %s1228_s5, %s1224_s23 }
  0x3c   : > { %542 = vmatpush.bf16.msra.mxu1 %v964_v4  ;;  %975 = vmatpush.bf16.msra.mxu3 %v964_v4  ;;  %v967_v48 = vld [vmem:[#allocation9 + $0x8] sm:$0xff]  ;;  %v966_v49 = vld [vmem:[#allocation9] sm:$0xff]  ;;  %v1086_v51 = vld [vmem:[%s1544_s4] ss:$0 sm:$0xff] }
  0x3d   : > { %p1226_p4 = pnand %p1225_p1, %p1449_p5  ;;  %p1231_p13 = por %p1230_p12, %p1229_p10 }
  0x3f   : > { %983 = vmatpush.bf16.msra.mxu2 %v972_v30  ;;  %p1227_p8 = pneg %p1226_p4 }
  0x40   : > { %543 = vmatpush.bf16.msra.mxu1 %v963_v5  ;;  %976 = vmatpush.bf16.msra.mxu3 %v963_v5 }
  0x41   : > { %p1232_p0 = pnand %p1231_p13, %p1227_p8 }
  0x43   : > { %984 = vmatpush.bf16.msra.mxu2 %v971_v31 }
  0x44   : > { %544 = vmatpush.bf16.msra.mxu1 %v962_v6  ;;  %977 = vmatpush.bf16.msra.mxu3 %v962_v6 }
  0x47   : > { %985 = vmatpush.bf16.msra.mxu2 %v970_v35 }
  0x48   : > { %545 = vmatpush.bf16.msra.mxu1 %v961_v9  ;;  %978 = vmatpush.bf16.msra.mxu3 %v961_v9 }
  0x49   : > { %881 = vmatmul.msk.bf16.gmra.mxu0 %vm419_vm0, %v954_v2 }
  0x4b   : > { %986 = vmatpush.bf16.msra.mxu2 %v969_v46 }
  0x4c   : > { %546 = vmatpush.bf16.msra.mxu1 %v960_v10  ;;  %979 = vmatpush.bf16.msra.mxu3 %v960_v10 }
  0x4f   : > { %987 = vmatpush.bf16.msra.mxu2 %v968_v47 }
  0x50   : > { %547 = vmatpush.bf16.msra.mxu1 %v959_v11  ;;  %980 = vmatpush.bf16.msra.mxu3 %v959_v11 }
  0x53   : > { %988 = vmatpush.bf16.msra.mxu2 %v967_v48 }
  0x54   : > { %548 = vmatpush.bf16.msra.mxu1 %v958_v12  ;;  %981 = vmatpush.bf16.msra.mxu3 %v958_v12 }
  0x57   : > { %989 = vmatpush.bf16.msra.mxu2 %v966_v49 }
  0x58   : > { %650 = vmatpush.bf16.msrb.mxu1 %v973_v28 }
  0x59   : > { %882 = vmatmul.msk.bf16.gmra.mxu0 %vm419_vm0, %v955_v7 }
  0x5c   : > { %651 = vmatpush.bf16.msrb.mxu1 %v972_v30 }
  0x60   : > { %652 = vmatpush.bf16.msrb.mxu1 %v971_v31 }
  0x64   : > { %653 = vmatpush.bf16.msrb.mxu1 %v970_v35 }
  0x68   : > { %654 = vmatpush.bf16.msrb.mxu1 %v969_v46 }
  0x69   : > { %883 = vmatmul.msk.bf16.gmra.mxu0 %vm419_vm0, %v956_v8 }
  0x6c   : > { %655 = vmatpush.bf16.msrb.mxu1 %v968_v47 }
  0x70   : > { %656 = vmatpush.bf16.msrb.mxu1 %v967_v48 }
  0x74   : > { %657 = vmatpush.bf16.msrb.mxu1 %v966_v49 }
  0xb6   : > { %v441_v13 = vpop.f32.mrf.mxu0 }
  0xb7   : > { %v442_v15 = vadd.f32 %v1085_v14, %v441_v13 }
  0xb9   : > { %v461_v18 = vmax.f32 %v442_v15, 0.0 }
  0xbe   : > { %v443_v16 = vpop.f32.mrf.mxu0 }
  0xbf   : > { %v444_v17 = vadd.f32 %v1085_v14, %v443_v16 }
  0xc1   : > { %v462_v19 = vmax.f32 %v444_v17, 0.0 }
  0xc3   : > { %v469_v20 = vpack.c.bf16 %v462_v19, %v461_v18 }
  0xc5   : > { %549 = vmatmul.bf16.vlgmr.msra.gmra.mxu1 %v469_v20  ;;  %v1087_v20 = vld [vmem:[%s1546_s6] ss:$0 sm:$0xff] }
  0xc6   : > { %v446_v21 = vpop.f32.mrf.mxu0 }
  0xc7   : > { %v447_v22 = vadd.f32 %v1085_v14, %v446_v21 }
  0xc9   : > { %v463_v25 = vmax.f32 %v447_v22, 0.0 }
  0xce   : > { %v448_v23 = vpop.f32.mrf.mxu0 }
  0xcf   : > { %v449_v24 = vadd.f32 %v1085_v14, %v448_v23 }
  0xd1   : > { %v464_v26 = vmax.f32 %v449_v24, 0.0 }
  0xd3   : > { %v470_v27 = vpack.c.bf16 %v464_v26, %v463_v25 }
  0xd5   : > { %554 = vmatmul.bf16.vlgmr.msra.gmra.mxu3 %v470_v27 }
  0xd6   : > { %v451_v29 = vpop.f32.mrf.mxu0 }
  0xd7   : > { %v452_v32 = vadd.f32 %v1085_v14, %v451_v29 }
  0xd9   : > { %v465_v36 = vmax.f32 %v452_v32, 0.0 }
  0xde   : > { %v453_v33 = vpop.f32.mrf.mxu0 }
  0xdf   : > { %v454_v34 = vadd.f32 %v1085_v14, %v453_v33 }
  0xe1   : > { %v466_v37 = vmax.f32 %v454_v34, 0.0 }
  0xe3   : > { %v471_v38 = vpack.c.bf16 %v466_v37, %v465_v36 }
  0xe5   : > { %559 = vmatmul.bf16.gmra.mxu3 %v471_v38 }
  0xe6   : > { %v456_v39 = vpop.f32.mrf.mxu0 }
  0xe7   : > { %v457_v40 = vadd.f32 %v1085_v14, %v456_v39 }
  0xe9   : > { %v467_v43 = vmax.f32 %v457_v40, 0.0 }
  0xee   : > { %v458_v41 = vpop.f32.mrf.mxu0 }
  0xef   : > { %v459_v42 = vadd.f32 %v1085_v14, %v458_v41 }
  0xf1   : > { %v468_v44 = vmax.f32 %v459_v42, 0.0 }
  0xf3   : > { %v472_v45 = vpack.c.bf16 %v468_v44, %v467_v43 }
  0xf5   : > { %564 = vmatmul.bf16.gmra.mxu3 %v472_v45 }
 0x142   : > { %v550_v50 = vpop.f32.mrf.mxu1 }
 0x143   : > { %v551_v52 = vadd.f32 %v1086_v51, %v550_v50 }
 0x145   : > { %v570_v55 = vmax.f32 %v551_v52, 0.0 }
 0x14a   : > { %v552_v53 = vpop.f32.mrf.mxu1 }
 0x14b   : > { %v553_v54 = vadd.f32 %v1086_v51, %v552_v53 }
 0x14d   : > { %v571_v56 = vmax.f32 %v553_v54, 0.0 }
 0x14f   : > { %v578_v57 = vpack.c.bf16 %v571_v56, %v570_v55 }
 0x151   : > { %658 = vmatmul.bf16.vlgmr.msrb.gmra.mxu1 %v578_v57 }
 0x158   : > { %v555_v58 = vpop.f32.mrf.mxu3 }
 0x159   : > { %v556_v59 = vadd.f32 %v1086_v51, %v555_v58 }
 0x15b   : > { %v572_v62 = vmax.f32 %v556_v59, 0.0 }
 0x160   : > { %v557_v60 = vpop.f32.mrf.mxu3 }
 0x161   : > { %v558_v61 = vadd.f32 %v1086_v51, %v557_v60 }
 0x163   : > { %v573_v63 = vmax.f32 %v558_v61, 0.0 }
 0x165   : > { %v579_v0 = vpack.c.bf16 %v573_v63, %v572_v62 }
 0x167   : > { %663 = vmatmul.bf16.vlgmr.msra.gmra.mxu2 %v579_v0 }
 0x168   : > { %v560_v1 = vpop.f32.mrf.mxu3 }
 0x169   : > { %v561_v2 = vadd.f32 %v1086_v51, %v560_v1 }
 0x16b   : > { %v574_v5 = vmax.f32 %v561_v2, 0.0 }
 0x170   : > { %v562_v3 = vpop.f32.mrf.mxu3 }
 0x171   : > { %v563_v4 = vadd.f32 %v1086_v51, %v562_v3 }
 0x173   : > { %v575_v6 = vmax.f32 %v563_v4, 0.0 }
 0x175   : > { %v580_v7 = vpack.c.bf16 %v575_v6, %v574_v5 }
 0x177   : > { %668 = vmatmul.bf16.gmra.mxu2 %v580_v7 }
 0x178   : > { %v565_v8 = vpop.f32.mrf.mxu3 }
 0x179   : > { %v566_v9 = vadd.f32 %v1086_v51, %v565_v8 }
 0x17b   : > { %v576_v12 = vmax.f32 %v566_v9, 0.0 }
 0x180   : > { %v567_v10 = vpop.f32.mrf.mxu3 }
 0x181   : > { %v568_v11 = vadd.f32 %v1086_v51, %v567_v10 }
 0x183   : > { %v577_v13 = vmax.f32 %v568_v11, 0.0 }
 0x185   : > { %v581_v14 = vpack.c.bf16 %v577_v13, %v576_v12 }
 0x187   : > { %673 = vmatmul.bf16.gmra.mxu2 %v581_v14 }
 0x1ce   : > { %v659_v17 = vpop.f32.mrf.mxu1 }
 0x1cf   : > { %v660_v23 = vadd.f32 %v1087_v20, %v659_v17 }
 0x1d1   : > { %v679_v27 = vmax.f32 %v660_v23, 0.0 }
 0x1d6   : > { %v661_v19 = vpop.f32.mrf.mxu1 }
 0x1d7   : > { %v662_v22 = vadd.f32 %v1087_v20, %v661_v19 }
 0x1d9   : > { %v680_v25 = vmax.f32 %v662_v22, 0.0 }
 0x1db   : > { %v687_v31 = vmax.f32 %v679_v27, %v680_v25 }
 0x1ea   : > { %v664_v15 = vpop.f32.mrf.mxu2 }
 0x1eb   : > { %v665_v24 = vadd.f32 %v1087_v20, %v664_v15 }
 0x1ed   : > { %v681_v28 = vmax.f32 %v665_v24, 0.0 }
 0x1ef   : > { %v688_v34 = vmax.f32 %v687_v31, %v681_v28 }
 0x1f2   : > { %v666_v16 = vpop.f32.mrf.mxu2 }
 0x1f3   : > { %v667_v26 = vadd.f32 %v1087_v20, %v666_v16 }
 0x1f5   : > { %v682_v32 = vmax.f32 %v667_v26, 0.0 }
 0x1f7   : > { %v689_v37 = vmax.f32 %v688_v34, %v682_v32 }
 0x1fa   : > { %v669_v18 = vpop.f32.mrf.mxu2 }
 0x1fb   : > { %v670_v29 = vadd.f32 %v1087_v20, %v669_v18 }
 0x1fd   : > { %v683_v35 = vmax.f32 %v670_v29, 0.0 }
 0x1ff   : > { %v690_v39 = vmax.f32 %v689_v37, %v683_v35 }
 0x202   : > { %v671_v21 = vpop.f32.mrf.mxu2 }
 0x203   : > { %v672_v33 = vadd.f32 %v1087_v20, %v671_v21 }
 0x205   : > { %v684_v38 = vmax.f32 %v672_v33, 0.0 }
 0x207   : > { %v691_v42 = vmax.f32 %v690_v39, %v684_v38 }
 0x20a   : > { %v674_v30 = vpop.f32.mrf.mxu2 }
 0x20b   : > { %v675_v36 = vadd.f32 %v1087_v20, %v674_v30 }
 0x20d   : > { %v685_v40 = vmax.f32 %v675_v36, 0.0 }
 0x20f   : > { %v692_v44 = vmax.f32 %v691_v42, %v685_v40 }
 0x212   : > { %v676_v41 = vpop.f32.mrf.mxu2 }
 0x213   : > { %v677_v43 = vadd.f32 %v1087_v20, %v676_v41 }
 0x215   : > { %v686_v45 = vmax.f32 %v677_v43, 0.0 }
 0x217   : > { %v693_v46 = vmax.f32 %v692_v44, %v686_v45 }
 0x219   : > { %v710_v47 = vpack.c.bf16 %v693_v46, %v693_v46 }
 0x21b   : > { %711 = vst [vmem:[%s376_s20] sm:$0xf] %v710_v47 }
 0x21c   : > { %1235 = shalt.err (!%p1232_p0)
}
 0x21d   : > { %1004 = dma.vmem_to_hbm [thread:$0]  (%p1449_p5), %s727_s21, 64, %s729_s10, %s713_s27  }
 0x21e PF: > { %s1571_s18 = sld [smem:[#allocation16_spill]]  ;;  %s740_s11 = sand.u32 1, %s1278_s24  }
 0x21f   : > { %p1021_p3 = pnand %p850_p11, %p1394_p6  ;;  %s741_s16 = scalar_lea.sflag [#allocation5], %s740_s11 }
 0x221   : > { %p1022_p7 = pneg %p1021_p3 }
 0x223   : > { %1273 = dma.done.wait (%p1022_p7), %s741_s16, 64  }
 0x224   : > { %1275 = vsyncadd (%p1022_p7), %s741_s16, 4294967232  ;;  %s25_s29 = sadd.s32 1, %s1571_s18   ;;  %s1572_s19 = sld [smem:[#allocation17_spill]] }
 0x225   : > { %p22_p9 = scmp.ge.s32.totalorder %s25_s29, 4   ;;  %s1573_s24 = smov %s1282_s25 }
 0x226   : > { %s1574_s25 = smov %s1286_s26  ;;  %s1575_s26 = smov %s1458_s14 }
 0x227   : > { %s1576_s27 = smov %s1294_s28  ;;  %24 = sbr.rel (!%p22_p9) target bundleno = 12 (0xc), region = 117 }
 0x22a   : > { %s1577_s28 = smov %s1572_s19 }
 0x22c   :  { %747 = vsyncpa [#allocation4], 1 }
 0x22d   :  { %749 = vsyncpa [#allocation4 + $0x1], 1 }
 0x22e   :  { %750 = vsyncpa [#allocation7], 1 }
 0x22f   :  { %751 = vsyncpa [#allocation10], 1 }
 0x230   :  { %752 = vsyncpa [#allocation5], 1 }
 0x231   :  { %754 = vsyncpa [#allocation5 + $0x1], 1 }

</bundles_post_ra>
